<compile_context>
chip_gen: v7x
topology: tpu7x:2x2x1
jax: 0.10.0
libtpu: 0.0.40
codegen_flags: <defaults>
</compile_context>

<pallas_src>
import functools
import math

import jax
import jax.numpy as jnp
import numpy as np
from jax import lax
from jax.experimental import pallas as pl
from jax.experimental.pallas import tpu as pltpu


def _round_up(a: int, b: int) -> int:
    return ((a + b - 1) // b) * b


def _rvq_kernel(x_ref, edist_ref, embed_ref, esqh_ref, qout_ref, codes_ref, *,
                embed_resident: bool, exact_dequant: bool, dist_precision):
    """One grid step = one (row-tile, quantizer-stage) pair.

    x_ref     : (TN, Dp)                 flattened input rows (resident across q)
    edist_ref : (n_q|1, Dp, K)           pre-transposed distance-dtype codebook(s)
    embed_ref : (n_q|1, K, Dp)           f32 codebook rows (for exact dequant)
    esqh_ref  : (n_q, K)                 precomputed 0.5*||e||^2 per stage (resident)
    qout_ref  : (TN, Dp)                 accumulated quantized output (resident across q)
    codes_ref : (1, TN, 1)               this stage's code indices for this tile
    """
    qi = pl.program_id(1)

    @pl.when(qi == 0)
    def _init():
        qout_ref[...] = jnp.zeros_like(qout_ref)

    x = x_ref[...]                          # (TN, Dp)
    qacc = qout_ref[...]                    # (TN, Dp)
    residual = x - qacc                     # (TN, Dp)  -- replaces a dedicated scratch buffer

    e_t = edist_ref[qi] if embed_resident else edist_ref[0]    # (Dp, K) distance dtype
    e = embed_ref[qi] if embed_resident else embed_ref[0]      # (K, Dp) f32

    # Distance score (argmax-equivalent): r.e - 0.5*||e||^2.  ||r||^2 dropped (row-constant),
    # 2x folded into the precomputed term.  bf16 inputs / f32 accumulation on the MXU.
    xe = jnp.dot(residual.astype(e_t.dtype), e_t,
                 preferred_element_type=jnp.float32,
                 precision=dist_precision)                     # (TN, K)
    score = xe - esqh_ref[pl.ds(qi, 1), :]                     # (TN, K), broadcast (1, K)

    tn, k = score.shape
    # First-argmax.  Mosaic only supports monoid reductions, so jnp.argmax (variadic reduce)
    # is avoided; this is the safe max-reduce + min-reduce formulation.  The lane iota is
    # shared with the one-hot below.
    max_val = jnp.max(score, axis=-1, keepdims=True)           # (TN, 1)
    lane_iota = lax.broadcasted_iota(jnp.int32, (tn, k), 1)
    idx = jnp.min(jnp.where(score == max_val, lane_iota, k),
                  axis=-1, keepdims=True)                      # (TN, 1) first-max index

    # Dequantize: one-hot row selection via the MXU.
    if exact_dequant:
        onehot = (lane_iota == idx).astype(jnp.float32)        # exact 0/1
        quant = jnp.dot(onehot, e.astype(jnp.float32),
                        preferred_element_type=jnp.float32,
                        precision=lax.Precision.HIGHEST)       # exact codebook rows
    else:
        onehot = (lane_iota == idx).astype(jnp.bfloat16)       # 0/1 exact in bf16
        quant = jnp.dot(onehot, e.astype(jnp.bfloat16),
                        preferred_element_type=jnp.float32)    # rows rounded to bf16

    qout_ref[...] = qacc + quant.astype(qout_ref.dtype)

    # Single small store of this stage's codes block (no RMW, no select, no init).
    codes_ref[...] = idx[None]                                 # (1, TN, 1)


def rvq_forward(x, embed, sample_rate, bandwidth=None, *,
                tile_n=None, distance_dtype=jnp.bfloat16,
                exact_dequant=True, embed_resident=None):
    """ResidualVectorQuantizer.forward (eval mode).

    x     : (B, D, T) float32   -- NCW, same axis convention as the PyTorch module
    embed : (n_q, K, D) float32 -- stacked codebooks
    Returns (quantized:(B,D,T), codes:(n_q,B,T) int32, bandwidth scalar, penalty scalar).

    distance_dtype : dtype of the distance-matmul operands (f32 accumulation either way).
        Default bf16 (~3x cheaper on the MXU); near-tied codes may differ from an f32
        reference.  Pass jnp.float32 for bit-matching code selection.
    exact_dequant  : if True (default) the one-hot dequant runs f32 at HIGHEST precision so
        quantized values are exact codebook rows; if False it runs in bf16.
    embed_resident : force (True) / forbid (False) keeping all codebooks VMEM-resident;
        None = auto based on size and the chip's VMEM capacity.
    """
    B, D, T = x.shape
    n_q_total, K, Dc = embed.shape
    assert D == Dc

    bw_per_q = math.log2(K) * sample_rate / 1000.0
    n_q = n_q_total
    if bandwidth is not None and bandwidth > 0.0:
        n_q = int(max(1, math.floor(bandwidth / bw_per_q)))
    n_q = min(n_q, n_q_total)
    embed = embed[:n_q]

    # b d t -> (b t) d
    xf = jnp.transpose(x, (0, 2, 1)).reshape(B * T, D)
    N = B * T
    # TODO(synk): the NCW<->token-matrix transposes (and the inverse on the output) are
    # wrapper-side HBM passes; a T-on-lanes kernel layout could remove them.

    # Pad feature dim to a multiple of 128 lanes (zero pads are exact for both matmuls).
    Dp = _round_up(D, 128)
    if Dp != D:
        xf = jnp.pad(xf, ((0, 0), (0, Dp - D)))
        embed_p = jnp.pad(embed, ((0, 0), (0, 0), (0, Dp - D)))
    else:
        embed_p = embed

    # Generation-aware sizing (v7x has 64 MiB VMEM and 2 TensorCores; v5e/v6e have 128 MiB).
    try:
        vmem_cap = int(pltpu.get_tpu_info().vmem_capacity_bytes)
    except Exception:
        vmem_cap = 128 << 20

    if tile_n is None:
        tile_n = 256 if (vmem_cap <= (64 << 20) and K >= 1024) else 512

    # Row tiling: multiple of 8 sublanes; aim for >= 2 row tiles so the "parallel" row axis
    # can split across TensorCores (v7x megacore), without shrinking large-N tiles.
    half = _round_up((N + 1) // 2, 8)
    TN = max(8, min(_round_up(tile_n, 8), half))
    Np = _round_up(N, TN)
    if Np != N:
        xf = jnp.pad(xf, ((0, Np - N), (0, 0)))
    n_tiles = Np // TN

    # Precompute 0.5*||e||^2 once (hoists the square + cross-lane reduce and the 2x rescale
    # out of the hot loop; argmax is invariant under the affine rescale).
    e_sq_half = 0.5 * jnp.sum(embed.astype(jnp.float32) ** 2, axis=-1)      # (n_q, K)

    # Pre-transposed, pre-cast distance operand: canonical (Dp, K) RHS for the MXU.
    embed_dist_t = jnp.transpose(embed_p, (0, 2, 1)).astype(distance_dtype)  # (n_q, Dp, K)

    e_item = jnp.dtype(embed_p.dtype).itemsize
    dd_item = jnp.dtype(distance_dtype).itemsize
    embed_bytes_all = n_q * K * Dp * (e_item + dd_item)

    # Keep all codebooks VMEM-resident only if they are small relative to this chip's VMEM
    # (Pallas double-buffers even constant-index blocks, so be conservative on v7x).
    resident_thresh = min(8 << 20, vmem_cap // 16)
    if embed_resident is None:
        embed_resident = embed_bytes_all <= resident_thresh
    # TODO(synk): single-buffering the constant-index codebook/e_sq specs
    # (pipeline_mode=pl.Buffered(1)) would halve their VMEM footprint.

    if embed_resident:
        edist_spec = pl.BlockSpec((n_q, Dp, K), lambda i, q: (0, 0, 0))
        embed_spec = pl.BlockSpec((n_q, K, Dp), lambda i, q: (0, 0, 0))
        per_stage_embed_bytes = embed_bytes_all
    else:
        edist_spec = pl.BlockSpec((1, Dp, K), lambda i, q: (q, 0, 0))
        embed_spec = pl.BlockSpec((1, K, Dp), lambda i, q: (q, 0, 0))
        per_stage_embed_bytes = K * Dp * (e_item + dd_item)

    # Rough VMEM budget (double-buffered blocks + intermediates), clamped to this chip.
    est = (2 * TN * Dp * 4            # x blocks
           + 2 * TN * Dp * 4          # qout blocks
           + 2 * TN * 4               # codes blocks
           + 2 * per_stage_embed_bytes
           + 2 * n_q * K * 4          # 0.5*||e||^2
           + 8 * TN * K * 4           # score / iota / mask / one-hot temporaries
           + 6 * TN * Dp * 4)         # residual / quant / cast temporaries
    vmem_ceiling = max(32 << 20, (vmem_cap * 3) // 4)   # ~96 MiB on 128-MiB parts, ~48 MiB on v7x
    vmem_limit = int(min(vmem_ceiling, max(32 << 20, 2 * est)))

    dist_precision = (lax.Precision.HIGHEST
                      if jnp.dtype(distance_dtype) == jnp.dtype(jnp.float32)
                      else lax.Precision.DEFAULT)

    kernel = functools.partial(
        _rvq_kernel,
        embed_resident=bool(embed_resident),
        exact_dequant=bool(exact_dequant),
        dist_precision=dist_precision,
    )

    qout, codes3 = pl.pallas_call(
        kernel,
        out_shape=(
            jax.ShapeDtypeStruct((Np, Dp), x.dtype),        # accumulated quantized output
            jax.ShapeDtypeStruct((n_q, Np, 1), jnp.int32),  # per-stage codes (no transpose needed)
        ),
        grid_spec=pltpu.PrefetchScalarGridSpec(
            num_scalar_prefetch=0,
            grid=(n_tiles, n_q),                            # q innermost (sequential carry)
            in_specs=[
                pl.BlockSpec((TN, Dp), lambda i, q: (i, 0)),    # x rows, resident across q
                edist_spec,                                      # distance codebook(s), (Dp,K)
                embed_spec,                                      # f32 codebook(s), (K,Dp)
                pl.BlockSpec((n_q, K), lambda i, q: (0, 0)),     # 0.5*||e||^2, resident
            ],
            out_specs=[
                pl.BlockSpec((TN, Dp), lambda i, q: (i, 0)),     # resident accumulator
                pl.BlockSpec((1, TN, 1), lambda i, q: (q, i, 0)),  # one small block per stage
            ],
        ),
        compiler_params=pltpu.CompilerParams(
            dimension_semantics=("parallel", "arbitrary"),
            vmem_limit_bytes=vmem_limit,
        ),
    )(xf, embed_dist_t, embed_p, e_sq_half)

    qout = qout[:N, :D]
    quantized = jnp.transpose(qout.reshape(B, T, D), (0, 2, 1))   # (B, D, T)
    codes_out = codes3[:, :N, 0].reshape(n_q, B, T)               # (n_q, B, T)
    bw = jnp.asarray(n_q * bw_per_q, dtype=x.dtype)
    # Eval mode: each VQ layer returns loss = [0.0]; torch.mean of the stack is 0.
    penalty = jnp.zeros((), dtype=x.dtype)
    return quantized, codes_out, bw, penalty


def _rvq_reference(x, embed, n_q):
    """Pure-JAX reference mirroring the PyTorch eval-mode forward (full distance formula)."""
    B, D, T = x.shape
    xf = jnp.transpose(x, (0, 2, 1)).reshape(B * T, D)
    residual = xf
    qout = jnp.zeros_like(xf)
    codes = []
    for qi in range(n_q):
        e = embed[qi]
        dist = -(jnp.sum(residual**2, axis=1, keepdims=True)
                 - 2.0 * jnp.matmul(residual, e.T, precision=lax.Precision.HIGHEST)
                 + jnp.sum(e**2, axis=1)[None, :])
        idx = jnp.argmax(dist, axis=-1)
        quant = e[idx]
        residual = residual - quant
        qout = qout + quant
        codes.append(idx.astype(jnp.int32))
    quantized = jnp.transpose(qout.reshape(B, T, D), (0, 2, 1))
    return quantized, jnp.stack(codes).reshape(n_q, B, T)


if __name__ == "__main__":
    key = jax.random.PRNGKey(0)
    B, D, T = 2, 32, 16       # batch, codebook dim, frames
    n_q, bins = 4, 128        # number of residual quantizers, codebook size
    sample_rate = 16000

    k_x, k_e = jax.random.split(key)
    x = jax.random.normal(k_x, (B, D, T), dtype=jnp.float32)
    bound = math.sqrt(6.0 / D)    # kaiming-uniform-like bounds, as if already inited
    embed = jax.random.uniform(k_e, (n_q, bins, D),
                               minval=-bound, maxval=bound, dtype=jnp.float32)

    q_ref, c_ref = _rvq_reference(x, embed, n_q)

    # 1) Exact path (f32 distance + exact dequant): bit-matching code selection vs reference.
    q1, c1, bw1, pen1 = rvq_forward(x, embed, sample_rate, distance_dtype=jnp.float32)
    jax.block_until_ready((q1, c1, bw1, pen1))
    assert q1.shape == (B, D, T) and c1.shape == (n_q, B, T)
    np.testing.assert_allclose(np.asarray(q1), np.asarray(q_ref), rtol=1e-5, atol=1e-5)
    np.testing.assert_array_equal(np.asarray(c1), np.asarray(c_ref))
    np.testing.assert_allclose(float(bw1), n_q * math.log2(bins) * sample_rate / 1000.0, rtol=1e-6)
    assert float(pen1) == 0.0

    # 2) Default fast path (bf16 distance matmul): codes may differ from f32 on near-ties,
    #    so check self-consistency: quantized == sum of the exact codebook rows it selected.
    q2, c2, _, _ = rvq_forward(x, embed, sample_rate)
    jax.block_until_ready((q2, c2))
    c2_np = np.asarray(c2)
    assert c2_np.shape == (n_q, B, T)
    assert c2_np.min() >= 0 and c2_np.max() < bins
    e_np = np.asarray(embed)
    gathered = np.zeros((n_q, B * T, D), np.float32)
    for qi in range(n_q):
        gathered[qi] = e_np[qi][c2_np[qi].reshape(-1)]
    q2_expect = gathered.sum(axis=0).reshape(B, T, D).transpose(0, 2, 1)
    np.testing.assert_allclose(np.asarray(q2), q2_expect, rtol=1e-5, atol=1e-5)

    # 3) Streamed-codebook path + 4 row tiles (exercises the non-resident BlockSpecs).
    q3, c3, _, _ = rvq_forward(x, embed, sample_rate, distance_dtype=jnp.float32,
                               embed_resident=False, tile_n=8)
    jax.block_until_ready((q3, c3))
    np.testing.assert_allclose(np.asarray(q3), np.asarray(q_ref), rtol=1e-5, atol=1e-5)
    np.testing.assert_array_equal(np.asarray(c3), np.asarray(c_ref))

    # 4) Bandwidth-limited n_q selection (bw_per_q = 7 * 16 = 112 kbps -> 2 quantizers).
    q4, c4, bw4, _ = rvq_forward(x, embed, sample_rate, bandwidth=2 * 112.0,
                                 distance_dtype=jnp.float32)
    jax.block_until_ready((q4, c4, bw4))
    q_ref2, c_ref2 = _rvq_reference(x, embed, 2)
    assert c4.shape == (2, B, T)
    np.testing.assert_allclose(np.asarray(q4), np.asarray(q_ref2), rtol=1e-5, atol=1e-5)
    np.testing.assert_array_equal(np.asarray(c4), np.asarray(c_ref2))

    print("KERNEL_OK")
</pallas_src>

<mosaic_0001>
module attributes {stable_mosaic.version = 11 : i64} {
  func.func @_rvq_kernel(%arg0: i32, %arg1: i32, %arg2: memref<16x128xf32, #tpu.memory_space<vmem>>, %arg3: memref<4x128x128xf32, #tpu.memory_space<vmem>>, %arg4: memref<4x128x128xf32, #tpu.memory_space<vmem>>, %arg5: memref<4x128xf32, #tpu.memory_space<vmem>>, %arg6: memref<16x128xf32, #tpu.memory_space<vmem>>, %arg7: memref<1x16x1xi32, #tpu.memory_space<vmem>>) attributes {dimension_semantics = [#tpu.dimension_semantics<parallel>, #tpu.dimension_semantics<arbitrary>], iteration_bounds = array<i64: 2, 4>, scalar_prefetch = 0 : i64, scratch_operands = 0 : i64, tpu.core_type = #tpu.core_type<tc>, window_params = [{transform_indices = @transform_0, window_bounds = array<i64: 16, 128>}, {pipeline_mode = #tpu.pipeline_mode<synchronous>, transform_indices = @transform_1, window_bounds = array<i64: 4, 128, 128>}, {pipeline_mode = #tpu.pipeline_mode<synchronous>, transform_indices = @transform_2, window_bounds = array<i64: 4, 128, 128>}, {pipeline_mode = #tpu.pipeline_mode<synchronous>, transform_indices = @transform_3, window_bounds = array<i64: 4, 128>}, {transform_indices = @transform_4, window_bounds = array<i64: 16, 128>}, {transform_indices = @transform_5, window_bounds = array<i64: 1, 16, 1>}]} {
    %c0_i32 = arith.constant 0 : i32
    %0 = arith.cmpi eq, %arg1, %c0_i32 : i32
    %1 = arith.extui %0 : i1 to i32
    %c0_i32_0 = arith.constant 0 : i32
    %2 = arith.cmpi ne, %1, %c0_i32_0 : i32
    scf.if %2 {
      %cst_17 = arith.constant 0.000000e+00 : f32
      %35 = vector.broadcast %cst_17 : f32 to vector<16x128xf32>
      %c0_18 = arith.constant 0 : index
      %c0_19 = arith.constant 0 : index
      %36 = vector.load %arg6[%c0_18, %c0_19] : memref<16x128xf32, #tpu.memory_space<vmem>>, vector<16x128xf32>
      tpu.vector_store %arg6[%c0_18, %c0_19], %35 {strides = array<i32>} : memref<16x128xf32, #tpu.memory_space<vmem>>, vector<16x128xf32>,
    } else {
    }
    %c0 = arith.constant 0 : index
    %c0_1 = arith.constant 0 : index
    %3 = vector.load %arg2[%c0, %c0_1] : memref<16x128xf32, #tpu.memory_space<vmem>>, vector<16x128xf32>
    %c0_2 = arith.constant 0 : index
    %c0_3 = arith.constant 0 : index
    %4 = vector.load %arg6[%c0_2, %c0_3] : memref<16x128xf32, #tpu.memory_space<vmem>>, vector<16x128xf32>
    %5 = arith.subf %3, %4 : vector<16x128xf32>
    %6 = arith.index_cast %arg1 : i32 to index
    %c0_4 = arith.constant 0 : index
    %c0_5 = arith.constant 0 : index
    %7 = vector.load %arg3[%6, %c0_4, %c0_5] : memref<4x128x128xf32, #tpu.memory_space<vmem>>, vector<1x128x128xf32>
    %8 = vector.shape_cast %7 : vector<1x128x128xf32> to vector<128x128xf32>
    %9 = arith.index_cast %arg1 : i32 to index
    %c0_6 = arith.constant 0 : index
    %c0_7 = arith.constant 0 : index
    %10 = vector.load %arg4[%9, %c0_6, %c0_7] : memref<4x128x128xf32, #tpu.memory_space<vmem>>, vector<1x128x128xf32>
    %11 = vector.shape_cast %10 : vector<1x128x128xf32> to vector<128x128xf32>
    %cst = arith.constant dense<0.000000e+00> : vector<16x128xf32>
    %12 = tpu.matmul %5, %8, %cst {dimension_numbers = #tpu.dot_dimension_numbers<[1], [0], [0], [1], [0, 0, 1, 1], [], []>, precision = #tpu.contract_precision<fp32>} : vector<16x128xf32>, vector<128x128xf32>, vector<16x128xf32> -> vector<16x128xf32>
    %13 = arith.index_cast %arg1 : i32 to index
    %c0_8 = arith.constant 0 : index
    %14 = vector.load %arg5[%13, %c0_8] : memref<4x128xf32, #tpu.memory_space<vmem>>, vector<1x128xf32>
    %15 = vector.broadcast %14 : vector<1x128xf32> to vector<16x128xf32>
    %16 = arith.subf %12, %15 : vector<16x128xf32>
    %cst_9 = arith.constant dense<0xFF800000> : vector<16xf32>
    %17 = vector.multi_reduction <maximumf>, %16, %cst_9 [1] : vector<16x128xf32> to vector<16xf32>
    %18 = vector.shape_cast %17 : vector<16xf32> to vector<16x1xf32>
    %19 = tpu.iota {dimensions = array<i32: 1>} : vector<16x128xi32>
    %20 = vector.broadcast %18 : vector<16x1xf32> to vector<16x128xf32>
    %21 = arith.cmpf oeq, %16, %20 : vector<16x128xf32>
    %c128_i32 = arith.constant 128 : i32
    %22 = vector.broadcast %c128_i32 : i32 to vector<16x128xi32>
    %23 = arith.select %21, %19, %22 : vector<16x128xi1>, vector<16x128xi32>
    %cst_10 = arith.constant dense<2147483647> : vector<16xi32>
    %24 = vector.multi_reduction <minsi>, %23, %cst_10 [1] : vector<16x128xi32> to vector<16xi32>
    %25 = vector.shape_cast %24 : vector<16xi32> to vector<16x1xi32>
    %26 = vector.broadcast %25 : vector<16x1xi32> to vector<16x128xi32>
    %27 = arith.cmpi eq, %19, %26 : vector<16x128xi32>
    %28 = arith.extui %27 : vector<16x128xi1> to vector<16x128xi32>
    %29 = arith.sitofp %28 : vector<16x128xi32> to vector<16x128xf32>
    %cst_11 = arith.constant dense<0.000000e+00> : vector<16x128xf32>
    %30 = tpu.matmul %29, %11, %cst_11 {dimension_numbers = #tpu.dot_dimension_numbers<[1], [0], [0], [1], [0, 0, 1, 1], [], []>, precision = #tpu.contract_precision<fp32>} : vector<16x128xf32>, vector<128x128xf32>, vector<16x128xf32> -> vector<16x128xf32>
    %31 = arith.addf %4, %30 : vector<16x128xf32>
    %c0_12 = arith.constant 0 : index
    %c0_13 = arith.constant 0 : index
    %32 = vector.load %arg6[%c0_12, %c0_13] : memref<16x128xf32, #tpu.memory_space<vmem>>, vector<16x128xf32>
    tpu.vector_store %arg6[%c0_12, %c0_13], %31 {strides = array<i32>} : memref<16x128xf32, #tpu.memory_space<vmem>>, vector<16x128xf32>,
    %33 = vector.shape_cast %25 : vector<16x1xi32> to vector<1x16x1xi32>
    %c0_14 = arith.constant 0 : index
    %c0_15 = arith.constant 0 : index
    %c0_16 = arith.constant 0 : index
    %34 = vector.load %arg7[%c0_14, %c0_15, %c0_16] : memref<1x16x1xi32, #tpu.memory_space<vmem>>, vector<1x16x1xi32>
    tpu.vector_store %arg7[%c0_14, %c0_15, %c0_16], %33 {strides = array<i32>} : memref<1x16x1xi32, #tpu.memory_space<vmem>>, vector<1x16x1xi32>,
    return
  }
  func.func @transform_0(%arg0: i32, %arg1: i32) -> (i32, i32) {
    %c0_i32 = arith.constant 0 : i32
    %c0_i32_0 = arith.constant 0 : i32
    return %arg0, %c0_i32 : i32, i32
  }
  func.func @transform_1(%arg0: i32, %arg1: i32) -> (i32, i32, i32) {
    %c0_i32 = arith.constant 0 : i32
    %c0_i32_0 = arith.constant 0 : i32
    %c0_i32_1 = arith.constant 0 : i32
    %c0_i32_2 = arith.constant 0 : i32
    return %c0_i32, %c0_i32_0, %c0_i32_1 : i32, i32, i32
  }
  func.func @transform_2(%arg0: i32, %arg1: i32) -> (i32, i32, i32) {
    %c0_i32 = arith.constant 0 : i32
    %c0_i32_0 = arith.constant 0 : i32
    %c0_i32_1 = arith.constant 0 : i32
    %c0_i32_2 = arith.constant 0 : i32
    return %c0_i32, %c0_i32_0, %c0_i32_1 : i32, i32, i32
  }
  func.func @transform_3(%arg0: i32, %arg1: i32) -> (i32, i32) {
    %c0_i32 = arith.constant 0 : i32
    %c0_i32_0 = arith.constant 0 : i32
    %c0_i32_1 = arith.constant 0 : i32
    return %c0_i32, %c0_i32_0 : i32, i32
  }
  func.func @transform_4(%arg0: i32, %arg1: i32) -> (i32, i32) {
    %c0_i32 = arith.constant 0 : i32
    %c0_i32_0 = arith.constant 0 : i32
    return %arg0, %c0_i32 : i32, i32
  }
  func.func @transform_5(%arg0: i32, %arg1: i32) -> (i32, i32, i32) {
    %c0_i32 = arith.constant 0 : i32
    %c0_i32_0 = arith.constant 0 : i32
    return %arg1, %arg0, %c0_i32 : i32, i32, i32
  }
}

</mosaic_0001>

<bundles_post_ra>
// kernel: tpu_custom_call.1
= control target key start
LH: loop header
LB: loop body
LE: loop exit
PB: predicated region body
PF: predicated region fallthrough
CT: control target
= control target key end

     0   :  { %s4302_s0 = inlined_call_operand.hbm [shape: f32[32,128], index: 0, kind: input, shape index: {}]   ;;  %s4303_s1 = inlined_call_operand.hbm [shape: f32[4,128,128], index: 1, kind: input, shape index: {}]   ;;  %s4304_s2 = inlined_call_operand.hbm [shape: f32[4,128,128], index: 2, kind: input, shape index: {}]   ;;  %s4305_s3 = inlined_call_operand.vmem [shape: f32[4,128], index: 3, kind: input, shape index: {}]   ;;  %s4306_s4 = inlined_call_operand.hbm [shape: f32[32,128], index: 4, kind: output, shape index: {0}]   ;;  %s4307_s5 = inlined_call_operand.vmem [shape: s32[4,32,1], index: 5, kind: output, shape index: {1}]  }
   0x1   :  { %4321 = sst [smem:[#allocation14_spill]] %s4303_s1 }
   0x2   :  { %11 = vsyncpa [#allocation3], 0 }
   0x3   :  { %13 = vsyncpa [#allocation3 + $0x1], 0 }
   0x4   :  { %14 = vsyncpa [#allocation6], 0 }
   0x5   :  { %15 = vsyncpa [#allocation4], 0 }
   0x6   :  { %17 = vsyncpa [#allocation4 + $0x1], 0  ;;  %s3370_s18 = smov 0   ;;  %s3372_s19 = smov 0  }
   0x7   :  { %s3374_s20 = smov 0   ;;  %s3376_s21 = smov 0  }
   0x8   :  { %s3378_s22 = smov 0   ;;  %s3380_s23 = smov 0  }
   0x9   :  { %s3382_s24 = smov 0   ;;  %s3384_s25 = smov 0  }
   0xa LB: > { %4322 = sst [smem:[#allocation12_spill]] %s3299_s18  ;;  %s1956_s26 = sadd.s32 4294967295, %s3327_s25   ;;  %s3327_s25 = sphi %s3384_s25, %s23_s25   ;;  %s3323_s24 = sphi %s3382_s24, %s4354_s24   ;;  %s3319_s23 = sphi %s3380_s23, %s4353_s23   ;;  %s3315_s22 = sphi %s3378_s22, %s4352_s22   ;;  %s3311_s21 = sphi %s3376_s21, %s4351_s21   ;;  %s3307_s20 = sphi %s3374_s20, %s4350_s20   ;;  %s3303_s19 = sphi %s3372_s19, %s4349_s19   ;;  %s3299_s18 = sphi %s3370_s18, %s4348_s18  }
   0xb   : > { %s1957_s27 = sadd.s32 4294967294, %s3327_s25   ;;  %p55_p0 = scmp.ne.s32.totalorder %s3303_s19, %s3299_s18 }
   0xc   : > { %p3414_p1 = scmp.eq.s32.totalorder %s1956_s26, 0  ;;  %p3418_p2 = scmp.eq.s32.totalorder %s1956_s26, 7 }
   0xd   : > { %p148_p3 = scmp.eq.s32.totalorder %s1957_s27, 7  ;;  %p1958_p5 = scmp.ge.s32.totalorder %s3327_s25, 1 }
   0xe   : > { %s4323_s28 = scalar_select %p3414_p1, 1, 0 }
   0xf   : > { %s4324_s29 = scalar_select %p3418_p2, 1, 0 }
  0x10   : > { %p3424_p4 = por %p3414_p1, %p55_p0  ;;  %p3429_p6 = por %p148_p3, %p55_p0 }
  0x11   : > { %p183_p7 = scmp.lt.s32.totalorder %s3327_s25, 9  ;;  %s3329_s8 = smov [#allocation5]  }
  0x12   : > { %s4325_s30 = scalar_select %p3424_p4, 1, 0 }
  0x13   : > { %s4326_s6 = scalar_select %p3429_p6, 1, 0 }
  0x14   : > { %p3434_p8 = pnand %p1958_p5, %p183_p7  ;;  %s195_s9 = sshll.u32 %s3329_s8, 4  ;;  %s196_s9 = int_to_ptr.vmem [resolvable:$true] %s195_s9 }
  0x15   : > { %4327 = sst [smem:[#allocation13_spill]] %s4326_s6  ;;  %s3330_s11 = smov [#allocation7]  }
  0x16   : > { %s4328_s7 = scalar_select %p3434_p8, 1, 0 }
  0x17   : > { %p3043_p9 = pneg %p3434_p8  ;;  %s208_s12 = sshll.u32 %s3330_s11, 4  ;;  %s3446_s12 = int_to_ptr.vmem [resolvable:$true] %s208_s12 }
  0x18   : > { %s4330_s1 = sld [smem:[#allocation14_spill]] }
  0x19   : > { %p3442_p10 = pnand %p3043_p9, %p3414_p1 }
  0x1b   : > { %p3141_p12 = pneg %p3442_p10 }
  0x1e   : > { %s3139_s15 = scalar_lea.hbm %s4330_s1, 8192 }
  0x1f   : > { %p3140_p11 = scmp.ne.s32.totalorder %s4330_s1, %s3139_s15  ;;  %p3146_p3 = scmp.lt.u32.totalorder %s3139_s15, %s4330_s1 }
  0x21   : > { %p3142_p13 = pnand %p3141_p12, %p3140_p11 }
  0x23   : > { %p3143_p0 = pneg %p3142_p13 }
  0x25   : > { %p3148_p5 = pnand %p3146_p3, %p3143_p0 }
  0x27   : > { %3151 = shalt.err (!%p3148_p5)
}
  0x28   : > { %s3152_s8 = scalar_lea.vmem %s196_s9, 8192  ;;  %p3160_p1 = scmp.lt.s32.totalorder %s196_s9, %s196_s9 }
  0x29   : > { %p3153_p7 = scmp.ne.s32.totalorder %s196_s9, %s3152_s8  ;;  %p3161_p4 = scmp.lt.s32.totalorder %s3152_s8, %s3152_s8 }
  0x2b   : > { %p3155_p9 = pnand %p3153_p7, %p3141_p12  ;;  %p3162_p8 = por %p3161_p4, %p3160_p1 }
  0x2d   : > { %p3156_p6 = pneg %p3155_p9 }
  0x2f   : > { %p3163_p2 = pnand %p3162_p8, %p3156_p6 }
  0x31   : > { %3166 = shalt.err (!%p3163_p2)
}
  0x32   : > { %s4314_s11 = smov 128   ;;  %s4315_s13 = smov 8  }
  0x33   : > { %3046 = dma.hbm_to_vmem [thread:$0]  (!%p3442_p10), %s4330_s1, 8192, %s196_s9, [#allocation6], %s4314_s11, %s4314_s11, %s4315_s13  }
  0x34   : > { %s3167_s26 = scalar_lea.hbm %s4304_s2, 8192 }
  0x35   : > { %p3168_p1 = scmp.ne.s32.totalorder %s4304_s2, %s3167_s26  ;;  %p3174_p6 = scmp.lt.u32.totalorder %s3167_s26, %s4304_s2 }
  0x37   : > { %p3170_p2 = pnand %p3168_p1, %p3141_p12 }
  0x39   : > { %p3171_p4 = pneg %p3170_p2 }
  0x3b   : > { %p3176_p8 = pnand %p3174_p6, %p3171_p4 }
  0x3d   : > { %3179 = shalt.err (!%p3176_p8)
}
  0x3e   : > { %s3180_s9 = scalar_lea.vmem %s3446_s12, 8192  ;;  %p3188_p3 = scmp.lt.s32.totalorder %s3446_s12, %s3446_s12 }
  0x3f   : > { %p3181_p11 = scmp.ne.s32.totalorder %s3446_s12, %s3180_s9  ;;  %p3189_p5 = scmp.lt.s32.totalorder %s3180_s9, %s3180_s9 }
  0x41   : > { %p3183_p13 = pnand %p3181_p11, %p3141_p12  ;;  %p3190_p7 = por %p3189_p5, %p3188_p3 }
  0x43   : > { %p3184_p0 = pneg %p3183_p13 }
  0x45   : > { %p3191_p9 = pnand %p3190_p7, %p3184_p0 }
  0x47   : > { %3194 = shalt.err (!%p3191_p9)
}
  0x48   : > { %3049 = dma.hbm_to_vmem [thread:$0]  (!%p3442_p10), %s4304_s2, 8192, %s3446_s12, [#allocation6], %s4314_s11, %s4314_s11, %s4315_s13  }
  0x49   : > { %s32_s10 = sadd.s32 1, %s3319_s23  ;;  %s35_s14 = sadd.s32 1, %s3323_s24 }
  0x4a   : > { %p33_p12 = scmp.ge.s32.totalorder %s32_s10, 4  ;;  %s42_s15 = sadd.s32 1, %s3307_s20 }
  0x4b   : > { %p49_p1 = scmp.ne.s32.totalorder %s3307_s20, %s3303_s19  ;;  %p50_p2 = scmp.eq.s32.totalorder %s3327_s25, 0 }
  0x4c   : > { %s4356_s10 = smov (%p33_p12, %s32_s10), 0  ;;  %s4358_s14 = smov (!%p33_p12, %s35_s14), %s3323_s24 }
  0x4d   : > { %p3510_p4 = por %p50_p2, %p49_p1  ;;  %p4332_p6 = scmp.ne.s32.totalorder %s4324_s29, 0 }
  0x4e   : > { %p37_p10 = scmp.ge.s32.totalorder %s4358_s14, 2  ;;  %p3060_p11 = scmp.lt.s32.totalorder %s3327_s25, 8 }
  0x4f   : > { %p3516_p8 = por %p4332_p6, %p49_p1  ;;  %s225_s12 = sand.u32 1, %s3307_s20  }
  0x50   : > { %s1989_s26 = sshll.u32 %s3323_s24, 8  ;;  %s4360_s14 = smov (%p37_p10, %s4358_s14), 0 }
  0x51   : > { %s1962_s27 = sshll.u32 %s225_s12, 4  ;;  %s39_s8 = ssub.s32 %s3323_s24, %s4360_s14 }
  0x52   : > { %p40_p13 = scmp.eq.s32.totalorder %s39_s8, 0  ;;  %s3530_s6 = scalar_lea.hbm %s4302_s0, %s1989_s26 }
  0x53   : > { %s229_s29 = scalar_lea.vmem [#allocation2], %s1962_s27  ;;  %p3534_p0 = pnand %p3060_p11, %p3510_p4 }
  0x54   : > { %s236_s11 = sshll.u32 %s229_s29, 4  ;;  %s3543_s8 = scalar_lea.sflag [#allocation3], %s225_s12  ;;  %s3541_s11 = int_to_ptr.vmem [resolvable:$true] %s236_s11 }
  0x55   : > { %s3539_s1 = scalar_select %p40_p13, %s3307_s20, %s42_s15  }
  0x56   : > { %s3195_s26 = scalar_lea.hbm %s3530_s6, 256  ;;  %p3197_p5 = pneg %p3534_p0 }
  0x57   : > { %p3196_p3 = scmp.ne.s32.totalorder %s3530_s6, %s3195_s26  ;;  %s3200_s9 = scalar_lea.hbm %s4302_s0, 512 }
  0x58   : > { %p3201_p12 = scmp.lt.u32.totalorder %s3530_s6, %s4302_s0  ;;  %p3202_p1 = scmp.lt.u32.totalorder %s3200_s9, %s3195_s26 }
  0x59   : > { %p3198_p7 = pnand %p3197_p5, %p3196_p3  ;;  %p3204_p4 = scmp.lt.u32.totalorder %s3195_s26, %s3530_s6 }
  0x5a   : > { %p3203_p2 = por %p3202_p1, %p3201_p12 }
  0x5b   : > { %p3199_p9 = pneg %p3198_p7 }
  0x5c   : > { %p3205_p6 = por %p3204_p4, %p3203_p2 }
  0x5e   : > { %p3206_p10 = pnand %p3205_p6, %p3199_p9 }
  0x60   : > { %3209 = shalt.err (!%p3206_p10)
}
  0x61   : > { %s3210_s15 = scalar_lea.vmem %s3541_s11, 256  ;;  %s3333_s12 = smov [#allocation2]  }
  0x62   : > { %p3211_p11 = scmp.ne.s32.totalorder %s3541_s11, %s3210_s15  ;;  %s3215_s16 = sshll.u32 %s3333_s12, 4  ;;  %s3216_s16 = int_to_ptr.vmem [resolvable:$false] %s3215_s16 }
  0x63   : > { %s3217_s27 = scalar_lea.vmem %s3216_s16, 512  ;;  %p3218_p7 = scmp.lt.s32.totalorder %s3541_s11, %s3216_s16 }
  0x64   : > { %p3213_p13 = pnand %p3211_p11, %p3197_p5  ;;  %p3219_p12 = scmp.lt.s32.totalorder %s3217_s27, %s3210_s15 }
  0x66   : > { %p3214_p3 = pneg %p3213_p13  ;;  %p3220_p1 = por %p3219_p12, %p3218_p7 }
  0x68   : > { %p3221_p2 = pnand %p3220_p1, %p3214_p3 }
  0x6a   : > { %3224 = shalt.err (!%p3221_p2)
}
  0x6b   : > { %s4335_s26 = smov 8   ;;  %s4336_s9 = smov 128  }
  0x6c   : > { %3053 = dma.hbm_to_vmem [thread:$0]  (!%p3534_p0), %s3530_s6, 256, %s3541_s11, %s3543_s8, %s4336_s9, %s4336_s9, %s4335_s26  }
  0x6d   : > { %p4337_p5 = scmp.ne.s32.totalorder %s4328_s7, 0 }
  0x6e   : > { %s3577_s18 = sand.u32 (!%p4337_p5), 1, %s3303_s19   ;;  %p4338_p9 = scmp.ne.s32.totalorder (!%p4337_p5), %s4325_s30, 0 }
  0x6f   : > { %248 = sbr.rel (%p4337_p5) target bundleno = 1390 (0x56e), region = 36  ;;  %s1966_s29 = sshll.u32 (!%p4337_p5), %s3577_s18, 4 }
  0x70   : > { %s251_s15 = scalar_lea.sflag (!%p4337_p5), [#allocation3], %s3577_s18  ;;  %s3581_s12 = scalar_lea.vmem (!%p4337_p5), [#allocation2], %s1966_s29 }
  0x76   : > { %3286 = dma.done.wait (%p4338_p9), %s251_s15, 256  }
  0x77   : > { %3288 = vsyncadd (%p4338_p9), %s251_s15, 4294967040  ;;  %p4339_p0 = scmp.ne.s32.totalorder %s4323_s28, 0 }
  0x79   : > { %3290 = dma.done.wait (%p4339_p0), [#allocation6], 16384  }
  0x7a   : > { %3292 = vsyncadd (%p4339_p0), [#allocation6], 4294950912  ;;  %s1970_s7 = sshll.u32 %s3315_s22, 1  ;;  %p301_p4 = scmp.lt.s32.totalorder %s3311_s21, 3 }
  0x7b   : > { %p303_p6 = scmp.lt.s32.totalorder %s1970_s7, 3  ;;  %s3599_s26 = scalar_lea.vmem [#allocation8], %s1966_s29 }
  0x7c   : > { %s302_s11 = scalar_select %p301_p4, %s3311_s21, 3 }
  0x7d   : > { %s4362_s7 = smov (!%p303_p6, %s1970_s7), 3  ;;  %p1973_p10 = scmp.ne.s32.totalorder %s3311_s21, 0 }
  0x7e   : > { %s1971_s13 = sshll.u32 %s302_s11, 2  ;;  %v3334_v0 = vmov (!%p1973_p10), 0.0  }
  0x7f   : > { %s306_s6 = sadd.s32 %s1971_s13, %s4362_s7  ;;  %313 = sbr.rel (%p1973_p10) target bundleno = 134 (0x86), region = 52  ;;  %314 = vst [vmem:[%s3599_s26] sm:$0xff] (!%p1973_p10), %v3334_v0  ;;  %315 = vst [vmem:[%s3599_s26 + $0x8] sm:$0xff] (!%p1973_p10), %v3334_v0 }
  0x80   : > { %s1972_s8 = sshll.u32 %s306_s6, 3 }
  0x81   : > { %s3597_s27 = scalar_lea.vmem %s4307_s5, %s1972_s8 }
  0x86 PF: > { %s1974_s28 = sshll.u32 %s3311_s21, 7  ;;  %v316_v1 = vld [vmem:[%s3581_s12] sm:$0xff]  ;;  %v317_v24 = vld [vmem:[%s3581_s12 + $0x8] sm:$0xff]  ;;  %s1041_s12 = scalar_lea.vmem %s4305_s3, %s3311_s21  ;;  %vm1781_vm4 = vcmask 7168  }
  0x87   : > { %v318_v2 = vld [vmem:[%s3599_s26] sm:$0xff]  ;;  %s3609_s9 = scalar_lea.vmem [#allocation5], %s1974_s28  ;;  %v319_v25 = vld [vmem:[%s3599_s26 + $0x8] sm:$0xff]  ;;  %s3853_s7 = scalar_lea.vmem [#allocation7], %s1974_s28 }
  0x88   : > { %v324_v3 = vld [vmem:[%s3609_s9] sm:$0xff]  ;;  %v325_v4 = vld [vmem:[%s3609_s9 + $0x8] sm:$0xff]  ;;  %v326_v5 = vld [vmem:[%s3609_s9 + $0x10] sm:$0xff]  ;;  %v320_v13 = vsub.f32 %v316_v1, %v318_v2  ;;  %v321_v31 = vsub.f32 %v317_v24, %v319_v25  ;;  %s1990_s21 = sshll.u32 %s3315_s22, 8  ;;  %s1807_s11 = sshll.u32 %s3599_s26, 4  ;;  %s4245_s11 = int_to_ptr.vmem [resolvable:$true] %s1807_s11 }
  0x89   : > { %v358_v6 = vand.u32 4294901760, %v324_v3  ;;  %v361_v7 = vand.u32 4294901760, %v325_v4  ;;  %v327_v8 = vld [vmem:[%s3609_s9 + $0x18] sm:$0xff]  ;;  %v364_v9 = vand.u32 4294901760, %v326_v5  ;;  %v328_v10 = vld [vmem:[%s3609_s9 + $0x20] sm:$0xff]  ;;  %v329_v11 = vld [vmem:[%s3609_s9 + $0x28] sm:$0xff]  ;;  %s4243_s8 = scalar_lea.hbm %s4306_s4, %s1990_s21 }
  0x8a   : > { %v367_v12 = vand.u32 4294901760, %v327_v8  ;;  %v370_v15 = vand.u32 4294901760, %v328_v10  ;;  %v373_v16 = vand.u32 4294901760, %v329_v11  ;;  %v3622_v18 = vld [vmem:[%s3609_s9 + $0x30] sm:$0xff]  ;;  %v3625_v19 = vld [vmem:[%s3609_s9 + $0x38] sm:$0xff]  ;;  %v3629_v20 = vand.u32 4294901760, %v320_v13 }
  0x8b   : > { %v3617_v14 = vpack.c.bf16 %v361_v7, %v358_v6  ;;  %v376_v22 = vand.u32 4294901760, %v3622_v18  ;;  %v379_v23 = vand.u32 4294901760, %v3625_v19  ;;  %v332_v26 = vld [vmem:[%s3609_s9 + $0x40] sm:$0xff]  ;;  %v333_v27 = vld [vmem:[%s3609_s9 + $0x48] sm:$0xff]  ;;  %v3645_v30 = vsub.f32 %v324_v3, %v358_v6  ;;  %v334_v35 = vld [vmem:[%s3609_s9 + $0x50] sm:$0xff]  ;;  %s1785_s22 = scalar_lea.sflag [#allocation4], %s3577_s18 }
  0x8c   : > { %v3619_v17 = vpack.c.bf16 %v367_v12, %v364_v9  ;;  %v3632_v21 = vpack.c.bf16 %v373_v16, %v370_v15  ;;  %v3641_v28 = vsub.f32 %v320_v13, %v3629_v20  ;;  %v382_v33 = vand.u32 4294901760, %v332_v26  ;;  %v335_v36 = vld [vmem:[%s3609_s9 + $0x58] sm:$0xff]  ;;  %v336_v38 = vld [vmem:[%s3609_s9 + $0x60] sm:$0xff]  ;;  %v337_v39 = vld [vmem:[%s3609_s9 + $0x68] sm:$0xff]  ;;  %s3225_s16 = scalar_lea.vmem %s4245_s11, 256  ;;  %s3337_s30 = smov [#allocation8]  }
  0x8d   : > { %2628 = vmatprep.subr.bf16.mxu0 %v3617_v14  ;;  %v3648_v32 = vpack.c.bf16 %v379_v23, %v376_v22  ;;  %v385_v34 = vand.u32 4294901760, %v333_v27  ;;  %v338_v40 = vld [vmem:[%s3609_s9 + $0x70] sm:$0xff]  ;;  %v3658_v41 = vsub.f32 %v325_v4, %v361_v7  ;;  %v339_v42 = vld [vmem:[%s3609_s9 + $0x78] sm:$0xff]  ;;  %v461_v44 = vand.u32 4294901760, %v3645_v30  ;;  %p3226_p11 = scmp.ne.s32.totalorder %s4245_s11, %s3225_s16 }
  0x8e   : > { %2630 = vmatpush3.bf16.msra.mxu0 %v3617_v14  ;;  %v440_v29 = vand.u32 4294901760, %v3641_v28  ;;  %v3663_v45 = vand.u32 4294901760, %v321_v31  ;;  %v3665_v46 = vsub.f32 %v326_v5, %v364_v9  ;;  %v388_v48 = vand.u32 4294901760, %v334_v35 }
  0x8f   : > { %2632 = vmatprep.subr.bf16.mxu0 %v3619_v17  ;;  %v3668_v47 = vpack.c.bf16 %v385_v34, %v382_v33  ;;  %v391_v49 = vand.u32 4294901760, %v335_v36  ;;  %v394_v50 = vand.u32 4294901760, %v336_v38  ;;  %v397_v51 = vand.u32 4294901760, %v337_v39  ;;  %p3227_p13 = pnand %p3226_p11, %p3516_p8 }
  0x90   : > { %v441_v37 = vsub.f32 %v3641_v28, %v440_v29  ;;  %v400_v52 = vand.u32 4294901760, %v338_v40  ;;  %v403_v53 = vand.u32 4294901760, %v339_v42  ;;  %v468_v54 = vand.u32 4294901760, %v3658_v41 }
  0x91   : > { %v3671_v55 = vsub.f32 %v327_v8, %v367_v12  ;;  %v3673_v56 = vsub.f32 %v328_v10, %v370_v15  ;;  %v462_v57 = vsub.f32 %v3645_v30, %v461_v44  ;;  %v3678_v58 = vsub.f32 %v321_v31, %v3663_v45  ;;  %p3228_p3 = pneg %p3227_p13 }
  0x92   : > { %2634 = vmatpush3.bf16.msra.mxu0 %v3619_v17  ;;  %v442_v43 = vand.u32 4294901760, %v441_v37  ;;  %v475_v59 = vand.u32 4294901760, %v3665_v46  ;;  %v3681_v60 = vsub.f32 %v329_v11, %v373_v16  ;;  %v3684_v61 = vpack.c.bf16 %v391_v49, %v388_v48 }
  0x93   : > { %2636 = vmatprep.subr.bf16.mxu0 %v3632_v21  ;;  %v3686_v62 = vpack.c.bf16 %v397_v51, %v394_v50  ;;  %v3688_v63 = vpack.c.bf16 %v403_v53, %v400_v52  ;;  %v469_v0 = vsub.f32 %v3658_v41, %v468_v54  ;;  %v482_v1 = vand.u32 4294901760, %v3671_v55 }
  0x94   : > { %2239 = vmatprep.mubr.f32.mxu0 %v442_v43  ;;  %v489_v2 = vand.u32 4294901760, %v3673_v56  ;;  %v463_v3 = vand.u32 4294901760, %v462_v57  ;;  %v450_v4 = vand.u32 4294901760, %v3678_v58  ;;  %v476_v5 = vsub.f32 %v3665_v46, %v475_v59 }
  0x95   : > { %v496_v6 = vand.u32 4294901760, %v3681_v60  ;;  %v3699_v7 = vsub.f32 %v3622_v18, %v376_v22  ;;  %v3702_v8 = vsub.f32 %v3625_v19, %v379_v23  ;;  %v3704_v9 = vsub.f32 %v332_v26, %v382_v33 }
  0x96   : > { %2638 = vmatpush3.bf16.msra.mxu0 %v3632_v21  ;;  %v3706_v10 = vsub.f32 %v333_v27, %v385_v34  ;;  %v3708_v11 = vsub.f32 %v334_v35, %v388_v48  ;;  %v3710_v12 = vsub.f32 %v335_v36, %v391_v49  ;;  %v3712_v13 = vsub.f32 %v336_v38, %v394_v50 }
  0x97   : > { %2640 = vmatprep.subr.bf16.mxu0 %v3648_v32  ;;  %v3714_v15 = vsub.f32 %v337_v39, %v397_v51  ;;  %v470_v16 = vand.u32 4294901760, %v469_v0  ;;  %v483_v24 = vsub.f32 %v3671_v55, %v482_v1  ;;  %v3717_v18 = vsub.f32 %v338_v40, %v400_v52 }
  0x98   : > { %v3719_v22 = vsub.f32 %v339_v42, %v403_v53  ;;  %v451_v19 = vsub.f32 %v3678_v58, %v450_v4  ;;  %v477_v23 = vand.u32 4294901760, %v476_v5  ;;  %v490_v25 = vsub.f32 %v3673_v56, %v489_v2 }
  0x99   : > { %v497_v26 = vsub.f32 %v3681_v60, %v496_v6  ;;  %v503_v27 = vand.u32 4294901760, %v3699_v7  ;;  %v510_v31 = vand.u32 4294901760, %v3702_v8  ;;  %v517_v33 = vand.u32 4294901760, %v3704_v9 }
  0x9a   : > { %2642 = vmatpush3.bf16.msra.mxu0 %v3648_v32  ;;  %v524_v34 = vand.u32 4294901760, %v3706_v10  ;;  %v531_v35 = vand.u32 4294901760, %v3708_v11  ;;  %v538_v36 = vand.u32 4294901760, %v3710_v12  ;;  %v545_v37 = vand.u32 4294901760, %v3712_v13 }
  0x9b   : > { %2644 = vmatprep.subr.bf16.mxu0 %v3668_v47  ;;  %v552_v38 = vand.u32 4294901760, %v3714_v15  ;;  %v559_v39 = vand.u32 4294901760, %v3717_v18  ;;  %v566_v40 = vand.u32 4294901760, %v3719_v22  ;;  %v3738_v42 = vpack.c.bf16 %v468_v54, %v461_v44 }
  0x9c   : > { %v3740_v43 = vpack.c.bf16 %v482_v1, %v475_v59  ;;  %v2659_v48 = vpack.c.bf16 %v470_v16, %v463_v3  ;;  %v3743_v49 = vpack.c.bf16 %v496_v6, %v489_v2  ;;  %v3745_v50 = vpack.c.bf16 %v510_v31, %v503_v27 }
  0x9d   : > { %v3747_v51 = vpack.c.bf16 %v524_v34, %v517_v33  ;;  %v484_v52 = vand.u32 4294901760, %v483_v24  ;;  %v3750_v53 = vpack.c.bf16 %v538_v36, %v531_v35  ;;  %v3752_v57 = vpack.c.bf16 %v552_v38, %v545_v37 }
  0x9e   : > { %2646 = vmatpush3.bf16.msra.mxu0 %v3668_v47  ;;  %v3754_v44 = vpack.c.bf16 %v566_v40, %v559_v39  ;;  %v452_v54 = vand.u32 4294901760, %v451_v19  ;;  %v491_v59 = vand.u32 4294901760, %v490_v25  ;;  %v498_v0 = vand.u32 4294901760, %v497_v26 }
  0x9f   : > { %2648 = vmatprep.subr.bf16.mxu0 %v3684_v61  ;;  %v2663_v1 = vpack.c.bf16 %v484_v52, %v477_v23  ;;  %v504_v2 = vsub.f32 %v3699_v7, %v503_v27  ;;  %v511_v3 = vsub.f32 %v3702_v8, %v510_v31  ;;  %v518_v24 = vsub.f32 %v3704_v9, %v517_v33 }
  0xa0   : > { %v2667_v5 = vpack.c.bf16 %v498_v0, %v491_v59  ;;  %v525_v19 = vsub.f32 %v3706_v10, %v524_v34  ;;  %v532_v25 = vsub.f32 %v3708_v11, %v531_v35  ;;  %v539_v31 = vsub.f32 %v3710_v12, %v538_v36 }
  0xa1   : > { %v505_v6 = vand.u32 4294901760, %v504_v2  ;;  %v512_v16 = vand.u32 4294901760, %v511_v3  ;;  %v519_v26 = vand.u32 4294901760, %v518_v24  ;;  %v553_v33 = vsub.f32 %v3714_v15, %v552_v38 }
  0xa2   : > { %2650 = vmatpush3.bf16.msra.mxu0 %v3684_v61  ;;  %v526_v27 = vand.u32 4294901760, %v525_v19  ;;  %v540_v59 = vand.u32 4294901760, %v539_v31  ;;  %v567_v2 = vsub.f32 %v3719_v22, %v566_v40  ;;  %v2691_v38 = vpack.c.bf16 %v3658_v41, %v3645_v30 }
  0xa3   : > { %2652 = vmatprep.subr.bf16.mxu0 %v3686_v62  ;;  %v2671_v23 = vpack.c.bf16 %v512_v16, %v505_v6  ;;  %v554_v35 = vand.u32 4294901760, %v553_v33  ;;  %v2699_v40 = vpack.c.bf16 %v3681_v60, %v3673_v56  ;;  %v2703_v6 = vpack.c.bf16 %v3702_v8, %v3699_v7  ;;  %v342_v7 = vld [vmem:[%s3853_s7 + $0x8] sm:$0xff]  ;;  %v3858_v8 = vld [vmem:[%s3853_s7 + $0x10] sm:$0xff] }
  0xa4   : > { %v2675_v52 = vpack.c.bf16 %v526_v27, %v519_v26  ;;  %v2707_v30 = vpack.c.bf16 %v3706_v10, %v3704_v9  ;;  %v2711_v41 = vpack.c.bf16 %v3710_v12, %v3708_v11  ;;  %v1097_v10 = vand.u32 4294901760, %v342_v7  ;;  %v3861_v11 = vld [vmem:[%s3853_s7 + $0x18] sm:$0xff] }
  0xa5   : > { %v1100_v12 = vand.u32 4294901760, %v3858_v8 }
  0xa6   : > { %2654 = vmatpush3.bf16.msra.mxu0 %v3686_v62 }
  0xa7   : > { %2656 = vmatprep.subr.bf16.mxu0 %v3688_v63 }
  0xaa   : > { %2658 = vmatpush3.bf16.msra.mxu0 %v3688_v63 }
  0xab   : > { %2660 = vmatprep.subr.bf16.mxu0 %v2659_v48 }
  0xad   : > { %2240 = vmatmul.mubr.f32.vlgmr.msra.gmra.mrb[0].mxu0 %v452_v54  ;;  %v533_v54 = vand.u32 4294901760, %v532_v25 }
  0xae   : > { %2662 = vmatpush3.bf16.msra.mxu0 %v2659_v48  ;;  %2274 = vmatprep.mubr.f32.mxu0 %v3629_v20  ;;  %v546_v48 = vsub.f32 %v3712_v13, %v545_v37  ;;  %v568_v37 = vand.u32 4294901760, %v567_v2 }
  0xaf   : > { %2664 = vmatprep.subr.bf16.mxu0 %v2663_v1  ;;  %v2679_v0 = vpack.c.bf16 %v540_v59, %v533_v54  ;;  %v350_v54 = vld [vmem:[%s3853_s7 + $0x48] sm:$0xff] }
  0xb0   : > { %v547_v34 = vand.u32 4294901760, %v546_v48  ;;  %v1121_v33 = vand.u32 4294901760, %v350_v54 }
  0xb2   : > { %2666 = vmatpush3.bf16.msra.mxu0 %v2663_v1  ;;  %v560_v1 = vsub.f32 %v3717_v18, %v559_v39  ;;  %v2683_v36 = vpack.c.bf16 %v554_v35, %v547_v34  ;;  %v2695_v39 = vpack.c.bf16 %v3671_v55, %v3665_v46  ;;  %v2715_v46 = vpack.c.bf16 %v3714_v15, %v3712_v13  ;;  %v3865_v13 = vld [vmem:[%s3853_s7 + $0x20] sm:$0xff]  ;;  %v3868_v15 = vld [vmem:[%s3853_s7 + $0x28] sm:$0xff]  ;;  %v352_v35 = vld [vmem:[%s3853_s7 + $0x58] sm:$0xff] }
  0xb3   : > { %2668 = vmatprep.subr.bf16.mxu0 %v2667_v5  ;;  %v2719_v55 = vpack.c.bf16 %v3719_v22, %v3717_v18  ;;  %v1103_v18 = vand.u32 4294901760, %v3861_v11  ;;  %v1127_v2 = vand.u32 4294901760, %v352_v35 }
  0xb4   : > { %v561_v3 = vand.u32 4294901760, %v560_v1 }
  0xb6   : > { %2670 = vmatpush3.bf16.msra.mxu0 %v2667_v5  ;;  %v2687_v5 = vpack.c.bf16 %v568_v37, %v561_v3  ;;  %v353_v3 = vld [vmem:[%s3853_s7 + $0x60] sm:$0xff]  ;;  %v354_v37 = vld [vmem:[%s3853_s7 + $0x68] sm:$0xff] }
  0xb7   : > { %2672 = vmatprep.subr.bf16.mxu0 %v2671_v23 }
  0xba   : > { %2674 = vmatpush3.bf16.msra.mxu0 %v2671_v23 }
  0xbb   : > { %2676 = vmatprep.subr.bf16.mxu0 %v2675_v52 }
  0xbe   : > { %2678 = vmatpush3.bf16.msra.mxu0 %v2675_v52  ;;  %v349_v52 = vld [vmem:[%s3853_s7 + $0x40] sm:$0xff] }
  0xbf   : > { %2680 = vmatprep.subr.bf16.mxu0 %v2679_v0  ;;  %v1118_v59 = vand.u32 4294901760, %v349_v52 }
  0xc1   : > { %v3917_v34 = vpack.c.bf16 %v1121_v33, %v1118_v59 }
  0xc2   : > { %2682 = vmatpush3.bf16.msra.mxu0 %v2679_v0  ;;  %v351_v0 = vld [vmem:[%s3853_s7 + $0x50] sm:$0xff] }
  0xc3   : > { %2684 = vmatprep.subr.bf16.mxu0 %v2683_v36  ;;  %v1124_v1 = vand.u32 4294901760, %v351_v0 }
  0xc6   : > { %2686 = vmatpush3.bf16.msra.mxu0 %v2683_v36  ;;  %v3923_v36 = vpack.c.bf16 %v1127_v2, %v1124_v1 }
  0xc7   : > { %2688 = vmatprep.subr.bf16.mxu0 %v2687_v5 }
  0xca   : > { %2690 = vmatpush3.bf16.msra.mxu0 %v2687_v5  ;;  %v1130_v5 = vand.u32 4294901760, %v353_v3 }
  0xcb   : > { %2692 = vmatprep.subr.bf16.mxu0 %v2691_v38 }
  0xcd   : > { %2275 = vmatmul.mubr.f32.vlgmr.msra.gmra.mrb[0].mxu0 %v3663_v45 }
  0xce   : > { %2694 = vmatpush3.bf16.msra.mxu0 %v2691_v38  ;;  %2309 = vmatprep.mubr.f32.mxu0 %v3641_v28  ;;  %v1133_v38 = vand.u32 4294901760, %v354_v37 }
  0xcf   : > { %2696 = vmatprep.subr.bf16.mxu0 %v2695_v39 }
  0xd2   : > { %2698 = vmatpush3.bf16.msra.mxu0 %v2695_v39  ;;  %v3929_v39 = vpack.c.bf16 %v1133_v38, %v1130_v5 }
  0xd3   : > { %2700 = vmatprep.subr.bf16.mxu0 %v2699_v40 }
  0xd6   : > { %2702 = vmatpush3.bf16.msra.mxu0 %v2699_v40 }
  0xd7   : > { %2704 = vmatprep.subr.bf16.mxu0 %v2703_v6 }
  0xda   : > { %2706 = vmatpush3.bf16.msra.mxu0 %v2703_v6  ;;  %v3933_v6 = vsub.f32 %v342_v7, %v1097_v10  ;;  %v3968_v7 = vsub.f32 %v352_v35, %v1127_v2 }
  0xdb   : > { %2708 = vmatprep.subr.bf16.mxu0 %v2707_v30 }
  0xde   : > { %2710 = vmatpush3.bf16.msra.mxu0 %v2707_v30  ;;  %v355_v30 = vld [vmem:[%s3853_s7 + $0x70] sm:$0xff] }
  0xdf   : > { %2712 = vmatprep.subr.bf16.mxu0 %v2711_v41 }
  0xe2   : > { %2714 = vmatpush3.bf16.msra.mxu0 %v2711_v41  ;;  %v356_v41 = vld [vmem:[%s3853_s7 + $0x78] sm:$0xff] }
  0xe3   : > { %2716 = vmatprep.subr.bf16.mxu0 %v2715_v46 }
  0xe6   : > { %2718 = vmatpush3.bf16.msra.mxu0 %v2715_v46  ;;  %v1136_v46 = vand.u32 4294901760, %v355_v30 }
  0xe7   : > { %2720 = vmatprep.subr.bf16.mxu0 %v2719_v55 }
  0xe8   : > { %v3991_v2 = vsub.f32 %v355_v30, %v1136_v46 }
  0xea   : > { %2722 = vmatpush3.bf16.msra.mxu0 %v2719_v55  ;;  %v1139_v55 = vand.u32 4294901760, %v356_v41 }
  0xeb   : > { %2724 = vmatprep.subr.bf16.mxu0 %v3617_v14 }
  0xed   : > { %2310 = vmatmul.mubr.f32.vlgmr.msra.gmra.mrb[0].mxu0 %v3678_v58 }
  0xee   : > { %2726 = vmatpush3.bf16.msra.mxu0 %v3617_v14  ;;  %2344 = vmatprep.mubr.f32.mxu0 %v440_v29  ;;  %v1053_v29 = vlaneseq }
  0xef   : > { %2728 = vmatprep.subr.bf16.mxu0 %v3619_v17 }
  0xf2   : > { %2730 = vmatpush3.bf16.msra.mxu0 %v3619_v17 }
  0xf3   : > { %2732 = vmatprep.subr.bf16.mxu0 %v3632_v21 }
  0xf6   : > { %2734 = vmatpush3.bf16.msra.mxu0 %v3632_v21 }
  0xf7   : > { %2736 = vmatprep.subr.bf16.mxu0 %v3648_v32 }
  0xfa   : > { %2738 = vmatpush3.bf16.msra.mxu0 %v3648_v32 }
  0xfb   : > { %2740 = vmatprep.subr.bf16.mxu0 %v3668_v47 }
  0xfe   : > { %2742 = vmatpush3.bf16.msra.mxu0 %v3668_v47 }
  0xff   : > { %2744 = vmatprep.subr.bf16.mxu0 %v3684_v61 }
 0x102   : > { %2746 = vmatpush3.bf16.msra.mxu0 %v3684_v61 }
 0x103   : > { %2748 = vmatprep.subr.bf16.mxu0 %v3686_v62 }
 0x106   : > { %2750 = vmatpush3.bf16.msra.mxu0 %v3686_v62 }
 0x107   : > { %2752 = vmatprep.subr.bf16.mxu0 %v3688_v63 }
 0x10a   : > { %2754 = vmatpush3.bf16.msra.mxu0 %v3688_v63 }
 0x10b   : > { %2756 = vmatprep.subr.bf16.mxu0 %v3738_v42 }
 0x10d   : > { %2345 = vmatmul.mubr.f32.vlgmr.msra.gmra.mrb[0].mxu0 %v450_v4  ;;  %v341_v4 = vld [vmem:[%s3853_s7] sm:$0xff] }
 0x10e   : > { %2758 = vmatpush3.bf16.msra.mxu0 %v3738_v42  ;;  %2379 = vmatprep.mubr.f32.mxu0 %v3629_v20  ;;  %v1094_v9 = vand.u32 4294901760, %v341_v4  ;;  %v1106_v42 = vand.u32 4294901760, %v3865_v13 }
 0x10f   : > { %2760 = vmatprep.subr.bf16.mxu0 %v3740_v43 }
 0x110   : > { %v3871_v22 = vpack.c.bf16 %v1097_v10, %v1094_v9  ;;  %v3931_v40 = vsub.f32 %v341_v4, %v1094_v9  ;;  %v3966_v4 = vsub.f32 %v351_v0, %v1124_v1 }
 0x112   : > { %2762 = vmatpush3.bf16.msra.mxu0 %v3740_v43  ;;  %v1109_v43 = vand.u32 4294901760, %v3868_v15  ;;  %2820 = vmatprep.subr.bf16.mxu1 %v3871_v22 }
 0x113   : > { %2764 = vmatprep.subr.bf16.mxu0 %v3743_v49  ;;  %2822 = vmatpush3.bf16.msra.mxu1 %v3871_v22 }
 0x116   : > { %2766 = vmatpush3.bf16.msra.mxu0 %v3743_v49  ;;  %v3879_v49 = vpack.c.bf16 %v1103_v18, %v1100_v12 }
 0x117   : > { %2768 = vmatprep.subr.bf16.mxu0 %v3745_v50 }
 0x118   : > { %2824 = vmatprep.subr.bf16.mxu1 %v3879_v49 }
 0x119   : > { %2826 = vmatpush3.bf16.msra.mxu1 %v3879_v49 }
 0x11a   : > { %2770 = vmatpush3.bf16.msra.mxu0 %v3745_v50  ;;  %v3882_v50 = vld [vmem:[%s3853_s7 + $0x30] sm:$0xff] }
 0x11b   : > { %2772 = vmatprep.subr.bf16.mxu0 %v3747_v51 }
 0x11e   : > { %2774 = vmatpush3.bf16.msra.mxu0 %v3747_v51  ;;  %v3885_v51 = vld [vmem:[%s3853_s7 + $0x38] sm:$0xff] }
 0x11f   : > { %2776 = vmatprep.subr.bf16.mxu0 %v3750_v53 }
 0x122   : > { %2778 = vmatpush3.bf16.msra.mxu0 %v3750_v53  ;;  %v3894_v53 = vpack.c.bf16 %v1109_v43, %v1106_v42 }
 0x123   : > { %2780 = vmatprep.subr.bf16.mxu0 %v3752_v57 }
 0x124   : > { %2828 = vmatprep.subr.bf16.mxu1 %v3894_v53 }
 0x125   : > { %2830 = vmatpush3.bf16.msra.mxu1 %v3894_v53 }
 0x126   : > { %2782 = vmatpush3.bf16.msra.mxu0 %v3752_v57  ;;  %v1112_v57 = vand.u32 4294901760, %v3882_v50 }
 0x127   : > { %2784 = vmatprep.subr.bf16.mxu0 %v3754_v44 }
 0x12a   : > { %2786 = vmatpush3.bf16.msra.mxu0 %v3754_v44  ;;  %v1115_v44 = vand.u32 4294901760, %v3885_v51 }
 0x12b   : > { %2788 = vmatprep.subr.bf16.mxu0 %v3617_v14 }
 0x12c   : > { %v3904_v16 = vpack.c.bf16 %v1115_v44, %v1112_v57 }
 0x12d   : > { %2380 = vmatmul.mubr.f32.vlgmr.msra.gmra.mrb[0].mxu0 %v3663_v45 }
 0x12e   : > { %2790 = vmatpush3.bf16.msra.mxu0 %v3617_v14  ;;  %2414 = vmatprep.mubr.f32.mxu0 %v3629_v20  ;;  %v1975_v14 = vld [vmem:[%s1041_s12] ss:$0 sm:$0xff] }
 0x12f   : > { %2792 = vmatprep.subr.bf16.mxu0 %v3619_v17  ;;  %2832 = vmatprep.subr.bf16.mxu1 %v3904_v16 }
 0x130   : > { %2834 = vmatpush3.bf16.msra.mxu1 %v3904_v16 }
 0x131   : > { %2836 = vmatprep.subr.bf16.mxu1 %v3917_v34 }
 0x132   : > { %2794 = vmatpush3.bf16.msra.mxu0 %v3619_v17 }
 0x133   : > { %2796 = vmatprep.subr.bf16.mxu0 %v3632_v21 }
 0x134   : > { %2838 = vmatpush3.bf16.msra.mxu1 %v3917_v34 }
 0x135   : > { %2840 = vmatprep.subr.bf16.mxu1 %v3923_v36 }
 0x136   : > { %2798 = vmatpush3.bf16.msra.mxu0 %v3632_v21 }
 0x137   : > { %2800 = vmatprep.subr.bf16.mxu0 %v3648_v32 }
 0x138   : > { %2842 = vmatpush3.bf16.msra.mxu1 %v3923_v36 }
 0x139   : > { %2844 = vmatprep.subr.bf16.mxu1 %v3929_v39 }
 0x13a   : > { %2802 = vmatpush3.bf16.msra.mxu0 %v3648_v32  ;;  %v3847_v32 = vand.u32 127, %v1053_v29 }
 0x13b   : > { %2804 = vmatprep.subr.bf16.mxu0 %v3668_v47 }
 0x13c   : > { %2846 = vmatpush3.bf16.msra.mxu1 %v3929_v39 }
 0x13e   : > { %2806 = vmatpush3.bf16.msra.mxu0 %v3668_v47 }
 0x13f   : > { %2808 = vmatprep.subr.bf16.mxu0 %v3684_v61 }
 0x142   : > { %2810 = vmatpush3.bf16.msra.mxu0 %v3684_v61 }
 0x143   : > { %2812 = vmatprep.subr.bf16.mxu0 %v3686_v62 }
 0x146   : > { %2814 = vmatpush3.bf16.msra.mxu0 %v3686_v62 }
 0x147   : > { %2816 = vmatprep.subr.bf16.mxu0 %v3688_v63 }
 0x14a   : > { %2818 = vmatpush3.bf16.msra.mxu0 %v3688_v63 }
 0x14d   : > { %2415 = vmatmul.mubr.f32.vlgmr.msra.gmra.mrb[0].mxu0 %v3663_v45 }
 0x220   : > { %v2416_v17 = vpop.f32.mrb[0].mxu0 }
 0x221   : > { %v1031_v20 = vpop.f32.mrb[1].mxu0  ;;  %v1048_v28 = vsub.f32 %v2416_v17, %v1975_v14  ;;  %v1204_v17 = vand.u32 4294901760, %v3933_v6 }
 0x222   : > { %v1047_v21 = vsub.f32 %v1031_v20, %v1975_v14  ;;  %v1197_v14 = vand.u32 4294901760, %v3931_v40  ;;  %v3941_v20 = vpack.c.bf16 %v1139_v55, %v1136_v46 }
 0x224   : > { %1049 = vmax.xlane.f32.xlu0 %v1047_v21  ;;  %2848 = vmatprep.subr.bf16.mxu1 %v3941_v20 }
 0x225   : > { %2850 = vmatpush3.bf16.msra.mxu1 %v3941_v20 }
 0x228   : > { %1051 = vmax.xlane.f32.xlu0 %v1048_v28 }
 0x2b1   : > { %v1050_v47 = vpop.xlane.xlu0 %1049 }
 0x2b2   : > { %vm1055_vm0 = vcmp.eq.f32.partialorder %v1047_v21, %v1050_v47  ;;  %v1198_v21 = vsub.f32 %v3931_v40, %v1197_v14 }
 0x2b3   : > { %v1057_v56 = vsel %vm1055_vm0, %v3847_v32, 128 }
 0x2b4   : > { %v1060_v45 = vshra.s32 %v1057_v56, 16  ;;  %v1059_v24 = vand.u32 65535, %v1057_v56  ;;  %v1199_v29 = vand.u32 4294901760, %v1198_v21  ;;  %v3993_v21 = vsub.f32 %v356_v41, %v1139_v55 }
 0x2b5   : > { %v1052_v58 = vpop.xlane.xlu0 %1051 }
 0x2b6   : > { %vm1056_vm1 = vcmp.eq.f32.partialorder %v1048_v28, %v1052_v58  ;;  %v1062_v60 = vcvt.s32.f32 %v1060_v45  ;;  %v1061_v23 = vcvt.s32.f32 %v1059_v24  ;;  %v1205_v28 = vsub.f32 %v3933_v6, %v1204_v17 }
 0x2b7   : > { %v1058_v61 = vsel %vm1056_vm1, %v3847_v32, 128  ;;  %v3954_v45 = vsub.f32 %v349_v52, %v1118_v59  ;;  %v3956_v58 = vsub.f32 %v350_v54, %v1121_v33  ;;  %v1267_v24 = vand.u32 4294901760, %v3966_v4 }
 0x2b8   : > { %1063 = vmin.xlane.f32.xlu1 %v1062_v60  ;;  %v1074_v62 = vshra.s32 %v1058_v61, 16  ;;  %v1073_v19 = vand.u32 65535, %v1058_v61  ;;  %v1206_v47 = vand.u32 4294901760, %v1205_v28  ;;  %v3982_v52 = vsub.f32 %v354_v37, %v1133_v38 }
 0x2b9   : > { %v1260_v61 = vand.u32 4294901760, %v3956_v58  ;;  %v4316_v38 = vand.u32 4294901760, %v3993_v21 }
 0x2ba   : > { %v1076_v63 = vcvt.s32.f32 %v1074_v62  ;;  %v1075_v31 = vcvt.s32.f32 %v1073_v19  ;;  %v3951_v56 = vpack.c.bf16 %v1206_v47, %v1199_v29  ;;  %v4320_v19 = vand.u32 4294901760, %v3968_v7 }
 0x2bb   : > { %v4318_v0 = vand.u32 4294901760, %v3982_v52  ;;  %v1303_v30 = vsub.f32 %v3993_v21, %v4316_v38 }
 0x2bc   : > { %1077 = vmin.xlane.f32.xlu1 %v1076_v63  ;;  %2852 = vmatprep.subr.bf16.mxu1 %v3951_v56 }
 0x2bd   : > { %v1304_v55 = vand.u32 4294901760, %v1303_v30 }
 0x345   : > { %v3909_v25 = vpop.xlane.xlu1 %1063 }
 0x346   : > { %vm1065_vm2 = vcmp.eq.f32.partialorder %v1062_v60, %v3909_v25  ;;  %v1253_v60 = vand.u32 4294901760, %v3954_v45 }
 0x347   : > { %v1066_v26 = vsel %vm1065_vm2, %v1061_v23, inf }
 0x348   : > { %1067 = vmin.xlane.f32.xlu0 %v1066_v26  ;;  %v1254_v62 = vsub.f32 %v3954_v45, %v1253_v60  ;;  %v1268_v26 = vsub.f32 %v3966_v4, %v1267_v24 }
 0x349   : > { %v3912_v27 = vpop.xlane.xlu1 %1077 }
 0x34a   : > { %vm1079_vm3 = vcmp.eq.f32.partialorder %v1076_v63, %v3912_v27  ;;  %v1261_v63 = vsub.f32 %v3956_v58, %v1260_v61  ;;  %v1255_v9 = vand.u32 4294901760, %v1254_v62  ;;  %v1269_v54 = vand.u32 4294901760, %v1268_v26 }
 0x34b   : > { %v1080_v48 = vsel %vm1079_vm3, %v1075_v31, inf  ;;  %v1275_v31 = vsub.f32 %v3968_v7, %v4320_v19  ;;  %v4012_v62 = vpack.c.bf16 %v3933_v6, %v3931_v40  ;;  %v4028_v26 = vpack.c.bf16 %v3993_v21, %v3991_v2 }
 0x34c   : > { %1081 = vmin.xlane.f32.xlu1 %v1080_v48  ;;  %v1262_v10 = vand.u32 4294901760, %v1261_v63  ;;  %v3980_v48 = vsub.f32 %v353_v3, %v1130_v5  ;;  %v1289_v3 = vsub.f32 %v3982_v52, %v4318_v0  ;;  %v4317_v5 = vand.u32 4294901760, %v3991_v2 }
 0x34d   : > { %v1276_v59 = vand.u32 4294901760, %v1275_v31  ;;  %v4016_v63 = vpack.c.bf16 %v3956_v58, %v3954_v45  ;;  %v1070_v31 = vcvt.f32.s32 %v3909_v25  ;;  %v4343_v45 = vand.u32 4294901760, %v3991_v2 }
 0x34e   : > { %v3972_v23 = vpack.c.bf16 %v1262_v10, %v1255_v9  ;;  %v4319_v33 = vand.u32 4294901760, %v3980_v48  ;;  %v1290_v28 = vand.u32 4294901760, %v1289_v3  ;;  %v1296_v29 = vsub.f32 %v3991_v2, %v4317_v5 }
 0x34f   : > { %v3986_v35 = vpack.c.bf16 %v1276_v59, %v1269_v54  ;;  %v4020_v9 = vpack.c.bf16 %v3968_v7, %v3966_v4  ;;  %v4024_v10 = vpack.c.bf16 %v3982_v52, %v3980_v48  ;;  %v4034_v59 = vsub.f32 %v3858_v8, %v1100_v12 }
 0x350   : > { %v1282_v1 = vsub.f32 %v3980_v48, %v4319_v33  ;;  %v1297_v46 = vand.u32 4294901760, %v1296_v29  ;;  %v1071_v3 = vshll.u32 %v1070_v31, 16  ;;  %v4049_v8 = vsub.f32 %v3865_v13, %v1106_v42 }
 0x351   : > { %v1211_v30 = vand.u32 4294901760, %v4034_v59  ;;  %v4344_v58 = vand.u32 4294901760, %v3993_v21 }
 0x352   : > { %v1283_v37 = vand.u32 4294901760, %v1282_v1  ;;  %v4008_v47 = vpack.c.bf16 %v1304_v55, %v1297_v46  ;;  %v4039_v1 = vsub.f32 %v3861_v11, %v1103_v18  ;;  %v4054_v11 = vsub.f32 %v3868_v15, %v1109_v43 }
 0x353   : > { %v1212_v15 = vsub.f32 %v4034_v59, %v1211_v30  ;;  %v1225_v31 = vand.u32 4294901760, %v4049_v8 }
 0x354   : > { %v4006_v41 = vpack.c.bf16 %v1290_v28, %v1283_v37  ;;  %v1084_v37 = vcvt.f32.s32 %v3912_v27  ;;  %v1218_v46 = vand.u32 4294901760, %v4039_v1  ;;  %v3335_v27 = vmov 0.0  }
 0x356   : > { %v1085_v12 = vshll.u32 %v1084_v37, 16  ;;  %v1219_v43 = vsub.f32 %v4039_v1, %v1218_v46  ;;  %v4085_v37 = vsub.f32 %v3882_v50, %v1112_v57  ;;  %v1226_v50 = vsub.f32 %v4049_v8, %v1225_v31 }
 0x358   : > { %v1220_v38 = vand.u32 4294901760, %v1219_v43 }
 0x3d5   : > { %v1068_v54 = vpop.xlane.xlu0 %1067 }
 0x3d6   : > { %v1069_v28 = vcvt.f32.s32 %v1068_v54  ;;  %v1232_v54 = vand.u32 4294901760, %v4054_v11 }
 0x3d8   : > { %v4042_v29 = vadd.s32 %v1071_v3, %v1069_v28  ;;  %v4090_v28 = vsub.f32 %v3885_v51, %v1115_v44  ;;  %v1233_v51 = vsub.f32 %v4054_v11, %v1232_v54  ;;  %v2955_v40 = vpack.c.bf16 %v1232_v54, %v1225_v31 }
 0x3d9   : > { %v1082_v25 = vpop.xlane.xlu1 %1081 }
 0x3da   : > { %vm1087_vm5 = vcmp.eq.s32.totalorder %v3847_v32, %v4042_v29  ;;  %1782 = vst.msk [vmem:[%s3597_s27] sm:$0xff] %vm1781_vm4, %v4042_v29  ;;  %v1083_v18 = vcvt.f32.s32 %v1082_v25  ;;  %v1246_v5 = vand.u32 4294901760, %v4090_v28  ;;  %v1234_v33 = vand.u32 4294901760, %v1233_v51 }
 0x3db   : > { %v1976_v55 = vsel %vm1087_vm5, 1.0, %v3335_v27 }
 0x3dc   : > { %v4064_v13 = vadd.s32 %v1085_v12, %v1083_v18  ;;  %v4066_v42 = vsub.f32 %v1976_v55, %v1976_v55  ;;  %v1213_v55 = vand.u32 4294901760, %v1212_v15 }
 0x3de   : > { %vm1088_vm6 = vcmp.eq.s32.totalorder %v3847_v32, %v4064_v13  ;;  %1783 = vst.msk [vmem:[%s3597_s27 + $0x8] sm:$0xff] %vm1781_vm4, %v4064_v13  ;;  %v1176_v3 = vand.u32 4294901760, %v4066_v42  ;;  %v2855_v43 = vpack.c.bf16 %v1220_v38, %v1213_v55  ;;  %s3229_s27 = sshll.u32 %s3337_s30, 4  ;;  %s3230_s27 = int_to_ptr.vmem [resolvable:$false] %s3229_s27 }
 0x3df   : > { %v1977_v25 = vsel %vm1088_vm6, 1.0, %v3335_v27  ;;  %v1239_v27 = vand.u32 4294901760, %v4085_v37  ;;  %s3231_s28 = scalar_lea.vmem %s3230_s27, 512  ;;  %p3232_p7 = scmp.lt.s32.totalorder %s4245_s11, %s3230_s27 }
 0x3e0   : > { %v1177_v12 = vsub.f32 %v4066_v42, %v1176_v3  ;;  %v4098_v18 = vsub.f32 %v1977_v25, %v1977_v25  ;;  %v1227_v25 = vand.u32 4294901760, %v1226_v50  ;;  %p3233_p12 = scmp.lt.s32.totalorder %s3231_s28, %s3225_s16 }
 0x3e1   : > { %v1240_v19 = vsub.f32 %v4085_v37, %v1239_v27  ;;  %v2959_v6 = vpack.c.bf16 %v1246_v5, %v1239_v27 }
 0x3e2   : > { %v1178_v57 = vand.u32 4294901760, %v1177_v12  ;;  %v1186_v44 = vand.u32 4294901760, %v4098_v18  ;;  %v1247_v12 = vsub.f32 %v4090_v28, %v1246_v5  ;;  %v2859_v38 = vpack.c.bf16 %v1234_v33, %v1227_v25  ;;  %p3234_p1 = por %p3233_p12, %p3232_p7 }
 0x3e3   : > { %v1241_v55 = vand.u32 4294901760, %v1240_v19  ;;  %v2891_v19 = vpack.c.bf16 %v4054_v11, %v4049_v8  ;;  %v2947_v33 = vpack.c.bf16 %v1204_v17, %v1197_v14  ;;  %v2963_v14 = vpack.c.bf16 %v1260_v61, %v1253_v60 }
 0x3e4   : > { %2449 = vmatprep.mubr.f32.mxu1 %v1178_v57  ;;  %v1187_v15 = vsub.f32 %v4098_v18, %v1186_v44  ;;  %v3336_v57 = vmov 1.0   ;;  %v1248_v50 = vand.u32 4294901760, %v1247_v12  ;;  %v4340_v17 = vand.u32 4294901760, %v3968_v7  ;;  %p3235_p2 = pnand %p3234_p1, %p3228_p3 }
 0x3e5   : > { %v4342_v5 = vand.u32 4294901760, %v3982_v52  ;;  %v2975_v60 = vpack.c.bf16 %v4344_v58, %v4343_v45 }
 0x3e6   : > { %v1188_v0 = vand.u32 4294901760, %v1187_v15  ;;  %v2863_v51 = vpack.c.bf16 %v1248_v50, %v1241_v55 }
 0x3e8   : > { %2450 = vmatmul.mubr.f32.vlgmr.msra.gmra.mrb[0].mxu1 %v1188_v0  ;;  %v2951_v0 = vpack.c.bf16 %v1218_v46, %v1211_v30 }
 0x3e9   : > { %2854 = vmatpush3.bf16.msra.mxu1 %v3951_v56  ;;  %2484 = vmatprep.mubr.msk.f32.mxu1 %vm1087_vm5, %v3336_v57  ;;  %v2887_v56 = vpack.c.bf16 %v4039_v1, %v4034_v59 }
 0x3ea   : > { %2856 = vmatprep.subr.bf16.mxu1 %v2855_v43 }
 0x3ed   : > { %2858 = vmatpush3.bf16.msra.mxu1 %v2855_v43 }
 0x3ee   : > { %2860 = vmatprep.subr.bf16.mxu1 %v2859_v38 }
 0x3f1   : > { %2862 = vmatpush3.bf16.msra.mxu1 %v2859_v38 }
 0x3f2   : > { %2864 = vmatprep.subr.bf16.mxu1 %v2863_v51 }
 0x3f5   : > { %2866 = vmatpush3.bf16.msra.mxu1 %v2863_v51 }
 0x3f6   : > { %2868 = vmatprep.subr.bf16.mxu1 %v3972_v23 }
 0x3f9   : > { %2870 = vmatpush3.bf16.msra.mxu1 %v3972_v23  ;;  %v2895_v23 = vpack.c.bf16 %v4090_v28, %v4085_v37 }
 0x3fa   : > { %2872 = vmatprep.subr.bf16.mxu1 %v3986_v35 }
 0x3fd   : > { %2874 = vmatpush3.bf16.msra.mxu1 %v3986_v35  ;;  %v2967_v35 = vpack.c.bf16 %v4340_v17, %v1267_v24 }
 0x3fe   : > { %2876 = vmatprep.subr.bf16.mxu1 %v4006_v41 }
 0x401   : > { %2878 = vmatpush3.bf16.msra.mxu1 %v4006_v41  ;;  %v4341_v41 = vand.u32 4294901760, %v3980_v48 }
 0x402   : > { %2880 = vmatprep.subr.bf16.mxu1 %v4008_v47 }
 0x405   : > { %2882 = vmatpush3.bf16.msra.mxu1 %v4008_v47  ;;  %v2971_v47 = vpack.c.bf16 %v4342_v5, %v4341_v41 }
 0x406   : > { %2884 = vmatprep.subr.bf16.mxu1 %v4012_v62 }
 0x408   : > { %2485 = vmatmul.mubr.msk.f32.vlgmr.msra.gmra.mrb[0].mxu1 %vm1088_vm6, %v3336_v57 }
 0x409   : > { %2886 = vmatpush3.bf16.msra.mxu1 %v4012_v62  ;;  %2519 = vmatprep.mubr.f32.mxu1 %v4066_v42 }
 0x40a   : > { %2888 = vmatprep.subr.bf16.mxu1 %v2887_v56 }
 0x40d   : > { %2890 = vmatpush3.bf16.msra.mxu1 %v2887_v56 }
 0x40e   : > { %2892 = vmatprep.subr.bf16.mxu1 %v2891_v19 }
 0x411   : > { %2894 = vmatpush3.bf16.msra.mxu1 %v2891_v19 }
 0x412   : > { %2896 = vmatprep.subr.bf16.mxu1 %v2895_v23 }
 0x415   : > { %2898 = vmatpush3.bf16.msra.mxu1 %v2895_v23 }
 0x416   : > { %2900 = vmatprep.subr.bf16.mxu1 %v4016_v63 }
 0x419   : > { %2902 = vmatpush3.bf16.msra.mxu1 %v4016_v63 }
 0x41a   : > { %2904 = vmatprep.subr.bf16.mxu1 %v4020_v9 }
 0x41d   : > { %2906 = vmatpush3.bf16.msra.mxu1 %v4020_v9 }
 0x41e   : > { %2908 = vmatprep.subr.bf16.mxu1 %v4024_v10 }
 0x421   : > { %2910 = vmatpush3.bf16.msra.mxu1 %v4024_v10 }
 0x422   : > { %2912 = vmatprep.subr.bf16.mxu1 %v4028_v26 }
 0x425   : > { %2914 = vmatpush3.bf16.msra.mxu1 %v4028_v26 }
 0x426   : > { %2916 = vmatprep.subr.bf16.mxu1 %v3871_v22 }
 0x428   : > { %2520 = vmatmul.mubr.f32.vlgmr.msra.gmra.mrb[0].mxu1 %v4098_v18 }
 0x429   : > { %2918 = vmatpush3.bf16.msra.mxu1 %v3871_v22  ;;  %2554 = vmatprep.mubr.f32.mxu1 %v1176_v3 }
 0x42a   : > { %2920 = vmatprep.subr.bf16.mxu1 %v3879_v49 }
 0x42d   : > { %2922 = vmatpush3.bf16.msra.mxu1 %v3879_v49 }
 0x42e   : > { %2924 = vmatprep.subr.bf16.mxu1 %v3894_v53 }
 0x431   : > { %2926 = vmatpush3.bf16.msra.mxu1 %v3894_v53 }
 0x432   : > { %2928 = vmatprep.subr.bf16.mxu1 %v3904_v16 }
 0x435   : > { %2930 = vmatpush3.bf16.msra.mxu1 %v3904_v16 }
 0x436   : > { %2932 = vmatprep.subr.bf16.mxu1 %v3917_v34 }
 0x439   : > { %2934 = vmatpush3.bf16.msra.mxu1 %v3917_v34 }
 0x43a   : > { %2936 = vmatprep.subr.bf16.mxu1 %v3923_v36 }
 0x43d   : > { %2938 = vmatpush3.bf16.msra.mxu1 %v3923_v36 }
 0x43e   : > { %2940 = vmatprep.subr.bf16.mxu1 %v3929_v39 }
 0x441   : > { %2942 = vmatpush3.bf16.msra.mxu1 %v3929_v39 }
 0x442   : > { %2944 = vmatprep.subr.bf16.mxu1 %v3941_v20 }
 0x445   : > { %2946 = vmatpush3.bf16.msra.mxu1 %v3941_v20 }
 0x446   : > { %2948 = vmatprep.subr.bf16.mxu1 %v2947_v33 }
 0x448   : > { %2555 = vmatmul.mubr.f32.vlgmr.msra.gmra.mrb[0].mxu1 %v1186_v44 }
 0x449   : > { %2950 = vmatpush3.bf16.msra.mxu1 %v2947_v33  ;;  %2589 = vmatprep.mubr.msk.f32.mxu1 %vm1087_vm5, %v3336_v57 }
 0x44a   : > { %2952 = vmatprep.subr.bf16.mxu1 %v2951_v0 }
 0x44d   : > { %2954 = vmatpush3.bf16.msra.mxu1 %v2951_v0 }
 0x44e   : > { %2956 = vmatprep.subr.bf16.mxu1 %v2955_v40 }
 0x451   : > { %2958 = vmatpush3.bf16.msra.mxu1 %v2955_v40 }
 0x452   : > { %2960 = vmatprep.subr.bf16.mxu1 %v2959_v6 }
 0x455   : > { %2962 = vmatpush3.bf16.msra.mxu1 %v2959_v6 }
 0x456   : > { %2964 = vmatprep.subr.bf16.mxu1 %v2963_v14 }
 0x459   : > { %2966 = vmatpush3.bf16.msra.mxu1 %v2963_v14 }
 0x45a   : > { %2968 = vmatprep.subr.bf16.mxu1 %v2967_v35 }
 0x45d   : > { %2970 = vmatpush3.bf16.msra.mxu1 %v2967_v35 }
 0x45e   : > { %2972 = vmatprep.subr.bf16.mxu1 %v2971_v47 }
 0x461   : > { %2974 = vmatpush3.bf16.msra.mxu1 %v2971_v47 }
 0x462   : > { %2976 = vmatprep.subr.bf16.mxu1 %v2975_v60 }
 0x465   : > { %2978 = vmatpush3.bf16.msra.mxu1 %v2975_v60 }
 0x466   : > { %2980 = vmatprep.subr.bf16.mxu1 %v3871_v22 }
 0x468   : > { %2590 = vmatmul.mubr.msk.f32.vlgmr.msra.gmra.mrb[0].mxu1 %vm1088_vm6, %v3336_v57 }
 0x469   : > { %2982 = vmatpush3.bf16.msra.mxu1 %v3871_v22  ;;  %2624 = vmatprep.mubr.msk.f32.mxu1 %vm1087_vm5, %v3336_v57 }
 0x46a   : > { %2984 = vmatprep.subr.bf16.mxu1 %v3879_v49 }
 0x46d   : > { %2986 = vmatpush3.bf16.msra.mxu1 %v3879_v49  ;;  %v3137_v49 = vld [vmem:[%s3599_s26 + $0x8] sm:$0xff] }
 0x46e   : > { %2988 = vmatprep.subr.bf16.mxu1 %v3894_v53 }
 0x471   : > { %2990 = vmatpush3.bf16.msra.mxu1 %v3894_v53 }
 0x472   : > { %2992 = vmatprep.subr.bf16.mxu1 %v3904_v16 }
 0x475   : > { %2994 = vmatpush3.bf16.msra.mxu1 %v3904_v16 }
 0x476   : > { %2996 = vmatprep.subr.bf16.mxu1 %v3917_v34 }
 0x479   : > { %2998 = vmatpush3.bf16.msra.mxu1 %v3917_v34  ;;  %v3138_v34 = vld [vmem:[%s3599_s26] sm:$0xff] }
 0x47a   : > { %3000 = vmatprep.subr.bf16.mxu1 %v3923_v36 }
 0x47d   : > { %3002 = vmatpush3.bf16.msra.mxu1 %v3923_v36 }
 0x47e   : > { %3004 = vmatprep.subr.bf16.mxu1 %v3929_v39 }
 0x481   : > { %3006 = vmatpush3.bf16.msra.mxu1 %v3929_v39 }
 0x482   : > { %3008 = vmatprep.subr.bf16.mxu1 %v3941_v20 }
 0x485   : > { %3010 = vmatpush3.bf16.msra.mxu1 %v3941_v20 }
 0x488   : > { %2625 = vmatmul.mubr.msk.f32.vlgmr.msra.gmra.mrb[0].mxu1 %vm1088_vm6, %v3336_v57 }
 0x55b   : > { %v2626_v22 = vpop.f32.mrb[0].mxu1 }
 0x55c   : > { %v1778_v53 = vadd.f32 %v3137_v49, %v2626_v22  ;;  %v1767_v16 = vpop.f32.mrb[1].mxu1 }
 0x55d   : > { %v1777_v32 = vadd.f32 %v3138_v34, %v1767_v16 }
 0x55e   : > { %1780 = vst [vmem:[%s3599_s26 + $0x8] sm:$0xff] %v1778_v53 }
 0x55f   : > { %1779 = vst [vmem:[%s3599_s26] sm:$0xff] %v1777_v32 }
 0x560   : > { %3238 = shalt.err (!%p3235_p2)
}
 0x561   : > { %s3239_s26 = scalar_lea.hbm %s4243_s8, 256  ;;  %s3243_s15 = scalar_lea.hbm %s4306_s4, 512 }
 0x562   : > { %p3240_p5 = scmp.ne.s32.totalorder %s4243_s8, %s3239_s26  ;;  %p3244_p4 = scmp.lt.u32.totalorder %s4243_s8, %s4306_s4 }
 0x563   : > { %p3245_p6 = scmp.lt.u32.totalorder %s3243_s15, %s3239_s26  ;;  %p3247_p11 = scmp.lt.u32.totalorder %s3239_s26, %s4243_s8 }
 0x564   : > { %p3241_p9 = pnand %p3240_p5, %p3516_p8 }
 0x565   : > { %p3246_p10 = por %p3245_p6, %p3244_p4 }
 0x566   : > { %p3242_p0 = pneg %p3241_p9 }
 0x567   : > { %p3248_p13 = por %p3247_p11, %p3246_p10 }
 0x569   : > { %p3249_p3 = pnand %p3248_p13, %p3242_p0 }
 0x56b   : > { %3252 = shalt.err (!%p3249_p3)
}
 0x56c   : > { %s3338_s21 = smov 128   ;;  %s3339_s13 = smov 8  }
 0x56d   : > { %3041 = dma.vmem_to_hbm [thread:$0]  (%p3516_p8), %s4245_s11, 256, %s4243_s8, %s1785_s22, %s3338_s21, %s3338_s21, %s3339_s13  }
 0x56e PF: > { %s4345_s6 = sld [smem:[#allocation12_spill]]  ;;  %s4346_s16 = sld [smem:[#allocation13_spill]] }
 0x56f   : > { %p3063_p7 = scmp.ge.s32.totalorder %s3327_s25, 2 }
 0x574   : > { %s1826_s30 = sand.u32 1, %s4345_s6   ;;  %p4347_p12 = scmp.ne.s32.totalorder %s4346_s16, 0 }
 0x575   : > { %s1827_s27 = scalar_lea.sflag [#allocation4], %s1826_s30 }
 0x576   : > { %p3055_p1 = pnand %p3063_p7, %p4347_p12 }
 0x578   : > { %3294 = dma.done.wait (!%p3055_p1), %s1827_s27, 256  }
 0x579   : > { %3296 = vsyncadd (!%p3055_p1), %s1827_s27, 4294967040  ;;  %s23_s25 = sadd.s32 1, %s3327_s25   ;;  %s4348_s18 = smov %s3303_s19 }
 0x57a   : > { %p20_p2 = scmp.ge.s32.totalorder %s23_s25, 10   ;;  %s4349_s19 = smov %s3307_s20 }
 0x57b   : > { %s4350_s20 = smov %s3539_s1  ;;  %s4351_s21 = smov %s3319_s23 }
 0x57c   : > { %s4352_s22 = smov %s3323_s24  ;;  %s4353_s23 = smov %s4356_s10 }
 0x57d   : > { %s4354_s24 = smov %s4360_s14  ;;  %22 = sbr.rel (!%p20_p2) target bundleno = 10 (0xa), region = 108 }
 0x584   :  { %1844 = vsyncpa [#allocation3], 1 }
 0x585   :  { %1846 = vsyncpa [#allocation3 + $0x1], 1 }
 0x586   :  { %1847 = vsyncpa [#allocation6], 1 }
 0x587   :  { %1848 = vsyncpa [#allocation4], 1 }
 0x588   :  { %1850 = vsyncpa [#allocation4 + $0x1], 1 }

</bundles_post_ra>
